<compile_context>
chip_gen: v6e
topology: v6e:2x2x1
jax: 0.10.0
libtpu: 0.0.40
codegen_flags: <defaults>
</compile_context>

<pallas_src>
import functools

import jax
import jax.numpy as jnp
from jax.experimental import pallas as pl
from jax.experimental.pallas import tpu as pltpu


def _tv_partial_kernel(x_ref, out_ref, *, width, n_rows):
    # x_ref: (TB, L) block of flattened H*W slabs (one row per (batch, channel))
    # out_ref: (1, 128) per-block partials -> lane 0: h_tv sum, lane 1: w_tv sum
    blk_rows, flat_len = x_ref.shape
    x = x_ref[...].astype(jnp.float32)

    # Tail block: rows past the true slab count hold unspecified data; zero
    # them (all-zero rows contribute zero to both sums).
    if n_rows % blk_rows != 0:
        base = pl.program_id(0) * blk_rows
        rid = base + jax.lax.broadcasted_iota(jnp.int32, (blk_rows, flat_len), 0)
        x = jnp.where(rid < n_rows, x, 0.0)

    # Vertical diffs: flat[k] - flat[k - W]  <->  x[h, w] - x[h-1, w]; all valid.
    dv = x[:, width:] - x[:, : flat_len - width]
    h_sum = jnp.sum(dv * dv)

    # Horizontal diffs: flat[k] - flat[k - 1], excluding pairs that cross a
    # row boundary (k % W == 0).
    dh = x[:, 1:] - x[:, : flat_len - 1]
    col = jax.lax.broadcasted_iota(jnp.int32, (blk_rows, flat_len - 1), 1)
    if width & (width - 1) == 0:  # power-of-two fast path (no integer modulo)
        same_row = ((col + 1) & (width - 1)) != 0
    else:
        same_row = ((col + 1) % width) != 0
    dh = jnp.where(same_row, dh, 0.0)
    w_sum = jnp.sum(dh * dh)

    lane = jax.lax.broadcasted_iota(jnp.int32, (1, 128), 1)
    out_ref[...] = jnp.where(lane == 0, h_sum, jnp.where(lane == 1, w_sum, 0.0))


def tv_loss(x, tv_loss_weight=1.0):
    """Pallas implementation of TVLoss.forward for NCHW input x."""
    B, C, H, W = x.shape
    N = B * C
    L = H * W
    xr = x.reshape(N, L)  # lane-dense: one (H*W)-long row per (batch, channel)

    itemsize = jnp.dtype(x.dtype).itemsize
    target_block_bytes = 6 * 1024 * 1024  # per input buffer (double-buffered)
    rows_per_block = max(1, target_block_bytes // (L * itemsize))
    if rows_per_block >= N:
        tb = N  # single block spanning the full row dim (always a legal block)
    else:
        # TODO(synk): if a single (8, H*W) block ever exceeds VMEM (huge images),
        # the L axis would additionally need halo tiling.
        tb = min(N, max(8, (rows_per_block // 8) * 8))  # sublane-aligned
    num_blocks = pl.cdiv(N, tb)

    kernel = functools.partial(_tv_partial_kernel, width=W, n_rows=N)

    partials = pl.pallas_call(
        kernel,
        out_shape=jax.ShapeDtypeStruct((num_blocks, 128), jnp.float32),
        grid_spec=pltpu.PrefetchScalarGridSpec(
            num_scalar_prefetch=0,
            grid=(num_blocks,),
            in_specs=[pl.BlockSpec((tb, L), lambda i: (i, 0))],
            out_specs=pl.BlockSpec((1, 128), lambda i: (i, 0)),
        ),
        compiler_params=pltpu.CompilerParams(
            dimension_semantics=("parallel",),  # per-block outputs -> no races
            vmem_limit_bytes=32 * 1024 * 1024,
        ),
        cost_estimate=pl.CostEstimate(
            flops=int(6 * N * L),
            transcendentals=0,
            bytes_accessed=int(N * L * itemsize + num_blocks * 128 * 4),
        ),
    )(xr)

    h_tv = jnp.sum(partials[:, 0])
    w_tv = jnp.sum(partials[:, 1])
    # counts match PyTorch's tensor_size(): C * H' * W'
    count_h = C * (H - 1) * W
    count_w = C * H * (W - 1)
    return tv_loss_weight * 2.0 * (h_tv / count_h + w_tv / count_w) / B


def _tv_loss_ref(x, tv_loss_weight=1.0):
    B, C, H, W = x.shape
    x = x.astype(jnp.float32)
    h_tv = jnp.sum((x[:, :, 1:, :] - x[:, :, :-1, :]) ** 2)
    w_tv = jnp.sum((x[:, :, :, 1:] - x[:, :, :, :-1]) ** 2)
    count_h = C * (H - 1) * W
    count_w = C * H * (W - 1)
    return tv_loss_weight * 2.0 * (h_tv / count_h + w_tv / count_w) / B


if __name__ == "__main__":
    key = jax.random.PRNGKey(0)
    x = jax.random.normal(key, (2, 4, 16, 16), dtype=jnp.float32)

    out = tv_loss(x, tv_loss_weight=1.0)
    out = jax.block_until_ready(out)

    ref = _tv_loss_ref(x, tv_loss_weight=1.0)
    assert jnp.allclose(out, ref, rtol=1e-5, atol=1e-5), (out, ref)

    print("KERNEL_OK")
</pallas_src>

<mosaic_0001>
module attributes {stable_mosaic.version = 11 : i64} {
  func.func @_tv_partial_kernel(%arg0: i32, %arg1: memref<8x256xf32, #tpu.memory_space<vmem>>, %arg2: memref<1x128xf32, #tpu.memory_space<vmem>>) attributes {dimension_semantics = [#tpu.dimension_semantics<parallel>], iteration_bounds = array<i64: 1>, scalar_prefetch = 0 : i64, scratch_operands = 0 : i64, tpu.core_type = #tpu.core_type<tc>, window_params = [{transform_indices = @transform_0, window_bounds = array<i64: 8, 256>}, {transform_indices = @transform_1, window_bounds = array<i64: 1, 128>}]} {
    %c0 = arith.constant 0 : index
    %c0_0 = arith.constant 0 : index
    %0 = vector.load %arg1[%c0, %c0_0] : memref<8x256xf32, #tpu.memory_space<vmem>>, vector<8x256xf32>
    %1 = vector.extract_strided_slice %0 {offsets = [0, 16], sizes = [8, 240], strides = [1, 1]} : vector<8x256xf32> to vector<8x240xf32>
    %2 = vector.extract_strided_slice %0 {offsets = [0, 0], sizes = [8, 240], strides = [1, 1]} : vector<8x256xf32> to vector<8x240xf32>
    %3 = arith.subf %1, %2 : vector<8x240xf32>
    %4 = arith.mulf %3, %3 : vector<8x240xf32>
    %5 = vector.shape_cast %4 : vector<8x240xf32> to vector<1x8x240xf32>
    %cst = arith.constant dense<0.000000e+00> : vector<1xf32>
    %6 = vector.multi_reduction <add>, %5, %cst [1, 2] : vector<1x8x240xf32> to vector<1xf32>
    %7 = vector.shape_cast %6 : vector<1xf32> to vector<1x1x1xf32>
    %8 = vector.extract %7[0, 0, 0] : f32 from vector<1x1x1xf32>
    %9 = vector.extract_strided_slice %0 {offsets = [0, 1], sizes = [8, 255], strides = [1, 1]} : vector<8x256xf32> to vector<8x255xf32>
    %10 = vector.extract_strided_slice %0 {offsets = [0, 0], sizes = [8, 255], strides = [1, 1]} : vector<8x256xf32> to vector<8x255xf32>
    %11 = arith.subf %9, %10 : vector<8x255xf32>
    %12 = tpu.iota {dimensions = array<i32: 1>} : vector<8x255xi32>
    %c1_i32 = arith.constant 1 : i32
    %13 = vector.broadcast %c1_i32 : i32 to vector<8x255xi32>
    %14 = arith.addi %12, %13 : vector<8x255xi32>
    %c15_i32 = arith.constant 15 : i32
    %15 = vector.broadcast %c15_i32 : i32 to vector<8x255xi32>
    %16 = arith.andi %14, %15 : vector<8x255xi32>
    %c0_i32 = arith.constant 0 : i32
    %17 = vector.broadcast %c0_i32 : i32 to vector<8x255xi32>
    %18 = arith.cmpi ne, %16, %17 : vector<8x255xi32>
    %cst_1 = arith.constant 0.000000e+00 : f32
    %19 = vector.broadcast %cst_1 : f32 to vector<8x255xf32>
    %20 = arith.select %18, %11, %19 : vector<8x255xi1>, vector<8x255xf32>
    %21 = arith.mulf %20, %20 : vector<8x255xf32>
    %22 = vector.shape_cast %21 : vector<8x255xf32> to vector<1x8x255xf32>
    %cst_2 = arith.constant dense<0.000000e+00> : vector<1xf32>
    %23 = vector.multi_reduction <add>, %22, %cst_2 [1, 2] : vector<1x8x255xf32> to vector<1xf32>
    %24 = vector.shape_cast %23 : vector<1xf32> to vector<1x1x1xf32>
    %25 = vector.extract %24[0, 0, 0] : f32 from vector<1x1x1xf32>
    %26 = tpu.iota {dimensions = array<i32: 1>} : vector<1x128xi32>
    %c0_i32_3 = arith.constant 0 : i32
    %27 = vector.broadcast %c0_i32_3 : i32 to vector<1x128xi32>
    %28 = arith.cmpi eq, %26, %27 : vector<1x128xi32>
    %c1_i32_4 = arith.constant 1 : i32
    %29 = vector.broadcast %c1_i32_4 : i32 to vector<1x128xi32>
    %30 = arith.cmpi eq, %26, %29 : vector<1x128xi32>
    %cst_5 = arith.constant 0.000000e+00 : f32
    %31 = vector.broadcast %25 : f32 to vector<1x128xf32>
    %32 = vector.broadcast %cst_5 : f32 to vector<1x128xf32>
    %33 = arith.select %30, %31, %32 : vector<1x128xi1>, vector<1x128xf32>
    %34 = vector.broadcast %8 : f32 to vector<1x128xf32>
    %35 = arith.select %28, %34, %33 : vector<1x128xi1>, vector<1x128xf32>
    %c0_6 = arith.constant 0 : index
    %c0_7 = arith.constant 0 : index
    %36 = vector.load %arg2[%c0_6, %c0_7] : memref<1x128xf32, #tpu.memory_space<vmem>>, vector<1x128xf32>
    tpu.vector_store %arg2[%c0_6, %c0_7], %35 {strides = array<i32>} : memref<1x128xf32, #tpu.memory_space<vmem>>, vector<1x128xf32>,
    return
  }
  func.func @transform_0(%arg0: i32) -> (i32, i32) {
    %c0_i32 = arith.constant 0 : i32
    %c0_i32_0 = arith.constant 0 : i32
    return %arg0, %c0_i32 : i32, i32
  }
  func.func @transform_1(%arg0: i32) -> (i32, i32) {
    %c0_i32 = arith.constant 0 : i32
    %c0_i32_0 = arith.constant 0 : i32
    return %arg0, %c0_i32 : i32, i32
  }
}

</mosaic_0001>

<bundles_post_ra>
// kernel: tpu_custom_call.1
= control target key start
LH: loop header
LB: loop body
LE: loop exit
PB: predicated region body
PF: predicated region fallthrough
CT: control target
= control target key end

     0   :  { %6 = vsyncpa [#allocation3], 0  ;;  %s200_s0 = inlined_call_operand.hbm [shape: f32[8,256], index: 0, kind: input, shape index: {}]   ;;  %s201_s1 = inlined_call_operand.hbm [shape: f32[1,128], index: 1, kind: output, shape index: {}]  }
   0x1   :  { %7 = vsyncpa [#allocation4], 0  ;;  %s178_s6 = smov [#allocation2]  }
   0x2   :  { %s14_s7 = sshll.u32 %s178_s6, 4  ;;  %s15_s7 = int_to_ptr.vmem [resolvable:$true] %s14_s7 }
   0x3   :  { %s142_s8 = scalar_lea.vmem %s15_s7, 256  ;;  %p147_p1 = scmp.lt.s32.totalorder %s15_s7, %s15_s7 }
   0x4   :  { %p143_p0 = scmp.ne.s32.totalorder %s15_s7, %s142_s8  ;;  %p148_p2 = scmp.lt.s32.totalorder %s142_s8, %s142_s8 }
   0x6   :  { %p149_p3 = por %p148_p2, %p147_p1 }
   0x8   :  { %p150_p4 = pnand %p149_p3, %p143_p0 }
   0xa   :  { %153 = shalt.err (!%p150_p4)
}
   0xb   :  { %17 = dma.hbm_to_vmem [thread:$0]  %s200_s0, 256, %s15_s7, [#allocation3]  }
   0xc   :  { %174 = dma.done.wait [#allocation3], 256  }
   0xd   :  { %175 = vsyncadd [#allocation3], 4294967040  ;;  %v21_v0 = vld [vmem:[#allocation2] sm:$0xff]  ;;  %s179_s11 = smov 16   ;;  %s180_s12 = smov 1   ;;  %v22_v1 = vld [vmem:[#allocation2 + $0x8] sm:$0xff]  ;;  %v68_v14 = vlaneseq }
   0xe   :  { %25 = vrot.lane.b32.xlu1 %v21_v0, %s179_s11  ;;  %58 = vrot.lane.b32.xlu0 %v21_v0, %s180_s12  ;;  %vm29_vm0 = vcmask 130048   ;;  %vm62_vm1 = vcmask 7168   ;;  %s181_s13 = smov 127   ;;  %s182_s0 = smov 112   ;;  %vm83_vm3 = vcmask 1039360   ;;  %vm43_vm5 = vcmask 916480  }
   0xf   :  { %v69_v15 = vand.u32 127, %v68_v14  ;;  %s183_s15 = smov [#allocation5]  }
  0x10   :  { %s115_s16 = sshll.u32 %s183_s15, 4  ;;  %s116_s16 = int_to_ptr.vmem [resolvable:$true] %s115_s16 }
  0x11   :  { %v70_v16 = vadd.s32 128, %v69_v15  ;;  %v71_v18 = vadd.s32 1, %v69_v15  ;;  %vm103_vm6 = vcmp.eq.s32.totalorder %v69_v15, 1  ;;  %vm102_vm7 = vcmp.eq.s32.totalorder %v69_v15, 0  ;;  %s154_s18 = scalar_lea.vmem %s116_s16, 16  ;;  %s158_s19 = scalar_lea.vmem %s116_s16, 32 }
  0x12   :  { %27 = vrot.lane.b32.xlu1 %v22_v1, %s179_s11  ;;  %60 = vrot.lane.b32.xlu0 %v22_v1, %s180_s12  ;;  %p155_p5 = scmp.ne.s32.totalorder %s116_s16, %s154_s18  ;;  %p159_p6 = scmp.lt.s32.totalorder %s116_s16, %s116_s16 }
  0x13   :  { %v72_v17 = vadd.s32 1, %v70_v16  ;;  %v73_v20 = vand.u32 15, %v71_v18  ;;  %p160_p7 = scmp.lt.s32.totalorder %s158_s19, %s154_s18 }
  0x15   :  { %v74_v19 = vand.u32 15, %v72_v17  ;;  %vm75_vm4 = vcmp.ne.s32.totalorder %v73_v20, 0  ;;  %p161_p8 = por %p160_p7, %p159_p6 }
  0x17   :  { %vm76_vm2 = vcmp.ne.s32.totalorder %v74_v19, 0  ;;  %p162_p9 = pnand %p161_p8, %p155_p5 }
  0x80   :  { %v26_v2 = vpop.permute.xlu1 %25  ;;  %v59_v3 = vpop.permute.xlu0 %58 }
  0x81   :  { %v33_v4 = vsub.f32 %v21_v0, %v26_v2  ;;  %v66_v5 = vsub.f32 %v21_v0, %v59_v3 }
  0x83   :  { %v35_v6 = vmul.f32 %v33_v4, %v33_v4  ;;  %79 = vrot.lane.b32.xlu0 %v66_v5, %s181_s13 }
  0x84   :  { %v28_v7 = vpop.permute.xlu1 %27  ;;  %v61_v8 = vpop.permute.xlu0 %60 }
  0x85   :  { %v30_v9 = vsel %vm29_vm0, %v26_v2, %v28_v7  ;;  %v63_v10 = vsel %vm62_vm1, %v59_v3, %v61_v8 }
  0x86   :  { %v34_v11 = vsub.f32 %v22_v1, %v30_v9  ;;  %v67_v12 = vsub.f32 %v22_v1, %v63_v10 }
  0x87   :  { %39 = vrot.lane.b32.xlu0 %v35_v6, %s182_s0 }
  0x88   :  { %81 = vrot.lane.b32.xlu1 %v67_v12, %s181_s13  ;;  %v36_v13 = vmul.f32 %v34_v11, %v34_v11 }
  0x8c   :  { %41 = vrot.lane.b32.xlu1 %v36_v13, %s182_s0 }
  0xf5   :  { %v80_v21 = vpop.permute.xlu0 %79 }
  0xf9   :  { %v40_v28 = vpop.permute.xlu0 %39 }
  0xfa   :  { %v82_v22 = vpop.permute.xlu1 %81 }
  0xfb   :  { %v84_v23 = vsel %vm83_vm3, %v80_v21, %v82_v22  ;;  %v88_v24 = vsel %vm76_vm2, %v82_v22, 0.0 }
  0xfc   :  { %v87_v25 = vsel %vm75_vm4, %v84_v23, 0.0  ;;  %v90_v26 = vmul.f32 %v88_v24, %v88_v24 }
  0xfd   :  { %v89_v27 = vmul.f32 %v87_v25, %v87_v25 }
  0xfe   :  { %v42_v29 = vpop.permute.xlu1 %41  ;;  %v91_v30 = vsel %vm83_vm3, %v90_v26, 0.0 }
  0xff   :  { %v44_v31 = vsel %vm43_vm5, %v40_v28, %v42_v29  ;;  %v47_v32 = vsel %vm43_vm5, %v42_v29, 0.0  ;;  %v92_v33 = vadd.f32 %v91_v30, %v89_v27 }
 0x100   :  { %v48_v34 = vadd.f32 %v47_v32, %v44_v31 }
 0x101   :  { %93 = vadd.xlane.f32.xlu1 %v92_v33 }
 0x102   :  { %49 = vadd.xlane.f32.xlu0 %v48_v34 }
 0x18a   :  { %v94_v35 = vpop.xlane.xlu1 %93 }
 0x18b   :  { %v95_v36 = vrot.slane %v94_v35, 4  ;;  %v50_v37 = vpop.xlane.xlu0 %49 }
 0x18c   :  { %v51_v38 = vrot.slane %v50_v37, 4 }
 0x18d   :  { %v96_v39 = vadd.f32 %v95_v36, %v94_v35 }
 0x18e   :  { %v52_v40 = vadd.f32 %v51_v38, %v50_v37 }
 0x18f   :  { %v97_v41 = vrot.slane %v96_v39, 2 }
 0x190   :  { %v53_v42 = vrot.slane %v52_v40, 2 }
 0x191   :  { %v98_v43 = vadd.f32 %v97_v41, %v96_v39 }
 0x192   :  { %v54_v44 = vadd.f32 %v53_v42, %v52_v40 }
 0x193   :  { %v99_v45 = vrot.slane %v98_v43, 1 }
 0x194   :  { %v55_v46 = vrot.slane %v54_v44, 1 }
 0x195   :  { %v100_v47 = vadd.f32 %v99_v45, %v98_v43 }
 0x196   :  { %v56_v48 = vadd.f32 %v55_v46, %v54_v44 }
 0x198   :  { %124 = vpush %v56_v48 }
 0x199   :  { %126 = vpush %v100_v47 }
 0x1c9   :  { %s125_s14 = spop %124 }
 0x1ca   :  { %v106_v49 = vstv %s125_s14  ;;  %s127_s17 = spop %126 }
 0x1cb   :  { %v104_v50 = vstv %s127_s17 }
 0x1cc   :  { %v105_v51 = vsel %vm103_vm6, %v104_v50, 0.0 }
 0x1cd   :  { %v107_v52 = vsel %vm102_vm7, %v106_v49, %v105_v51 }
 0x1ce   :  { %108 = vst [vmem:[#allocation5] sm:$0x1] %v107_v52 }
 0x1cf   :  { %165 = shalt.err (!%p162_p9)
}
 0x1d0   :  { %118 = dma.vmem_to_hbm [thread:$0]  %s116_s16, 16, %s201_s1, [#allocation4]  }
 0x1d1   :  { %176 = dma.done.wait [#allocation4], 16  }
 0x1d2   :  { %177 = vsyncadd [#allocation4], 4294967280 }
 0x1d3   :  { %122 = vsyncpa [#allocation3], 1 }
 0x1d4   :  { %123 = vsyncpa [#allocation4], 1 }

</bundles_post_ra>
